<compile_context>
chip_gen: v7x
topology: tpu7x:2x2x1
jax: 0.10.0
libtpu: 0.0.40
codegen_flags: <defaults>
</compile_context>

<pallas_src>
import numpy as np
import jax
import jax.numpy as jnp
from jax.experimental import pallas as pl
from jax.experimental.pallas import tpu as pltpu


# --------------------------------------------------------------------------------
# Deterministic JPEG constants (same values the PyTorch module builds in __init__)
# --------------------------------------------------------------------------------
def quality_to_factor(quality):
    # NOTE: Python branch -> quality must stay a static Python number (not traced).
    if quality < 50:
        quality = 5000.0 / quality
    else:
        quality = 200.0 - quality * 2
    return quality / 100.0


_Y_TABLE = np.array(
    [[16, 11, 10, 16, 24, 40, 51, 61],
     [12, 12, 14, 19, 26, 58, 60, 55],
     [14, 13, 16, 24, 40, 57, 69, 56],
     [14, 17, 22, 29, 51, 87, 80, 62],
     [18, 22, 37, 56, 68, 109, 103, 77],
     [24, 35, 55, 64, 81, 104, 113, 92],
     [49, 64, 78, 87, 103, 121, 120, 101],
     [72, 92, 95, 98, 112, 100, 103, 99]], dtype=np.float32).T

_C_TABLE = np.full((8, 8), 99.0, dtype=np.float32)
_C_TABLE[:4, :4] = np.array([[17, 18, 24, 47], [18, 21, 26, 66],
                             [24, 26, 56, 99], [47, 66, 99, 99]],
                            dtype=np.float32).T


def _dct_mats_8():
    """8x8 separable DCT basis with the reference's alpha/0.25 scaling folded in.

    Reference:  coef = (alpha ⊗ alpha) * 0.25 * C^T (X - 128) C,  C[x,u]=cos((2x+1)uπ/16)
    Here:       coef = Dl @ (X - 128) @ Dr,   Dl = 0.5*diag(alpha)@C^T,  Dr = 0.5*C@diag(alpha)
    IDCT:       X    = Dl^T @ coef @ Dr^T + 128   (orthogonal transform)
    """
    x = np.arange(8, dtype=np.float64)
    C = np.cos((2.0 * x[:, None] + 1.0) * x[None, :] * np.pi / 16.0)   # C[x, u]
    alpha = np.array([1.0 / np.sqrt(2.0)] + [1.0] * 7)
    Dl = 0.5 * alpha[:, None] * C.T      # (u, x)
    Dr = 0.5 * C * alpha[None, :]        # (y, v)
    return Dl.astype(np.float32), Dr.astype(np.float32)


def _block_diag(m, reps):
    return np.kron(np.eye(reps, dtype=np.float32), m).astype(np.float32)


def _build_constants(factor, strip_h, w_tile):
    """All matmul matrices / quant maps, folded at trace time (numpy)."""
    assert strip_h % 16 == 0 and w_tile % 16 == 0
    Dl, Dr = _dct_mats_8()

    # Luma: block-diagonal DCT over a (strip_h, w_tile) strip; IDCT = transpose.
    ly = _block_diag(Dl, strip_h // 8)            # (strip_h, strip_h)
    ry = _block_diag(Dr, w_tile // 8)             # (w_tile,  w_tile)
    ily = np.ascontiguousarray(ly.T)
    iry = np.ascontiguousarray(ry.T)

    # Chroma: fold 2x2 average pool into the DCT and 2x NN upsample into the IDCT.
    hs, ws = strip_h // 2, w_tile // 2
    Pl = np.zeros((hs, strip_h), np.float32)      # row-pair averaging (left)
    Pl[np.arange(hs), 2 * np.arange(hs)] = 0.5
    Pl[np.arange(hs), 2 * np.arange(hs) + 1] = 0.5
    Pr = np.zeros((w_tile, ws), np.float32)       # col-pair averaging (right)
    Pr[2 * np.arange(ws), np.arange(ws)] = 0.5
    Pr[2 * np.arange(ws) + 1, np.arange(ws)] = 0.5
    Ul = np.zeros((strip_h, hs), np.float32)      # row repeat (left)
    Ul[2 * np.arange(hs), np.arange(hs)] = 1.0
    Ul[2 * np.arange(hs) + 1, np.arange(hs)] = 1.0
    Ur = np.zeros((ws, w_tile), np.float32)       # col repeat (right)
    Ur[np.arange(ws), 2 * np.arange(ws)] = 1.0
    Ur[np.arange(ws), 2 * np.arange(ws) + 1] = 1.0

    dl_c = _block_diag(Dl, hs // 8)               # (hs, hs)
    dr_c = _block_diag(Dr, ws // 8)               # (ws, ws)
    lc = dl_c @ Pl                                # (hs, strip_h)  pool + DCT (left)
    rc = Pr @ dr_c                                # (w_tile, ws)   pool + DCT (right)
    mcl = Ul @ dl_c.T                             # (strip_h, hs)  IDCT + upsample (left)
    mcr = dr_c.T @ Ur                             # (ws, w_tile)   IDCT + upsample (right)

    qy = np.tile(_Y_TABLE * factor, (strip_h // 8, w_tile // 8)).astype(np.float32)
    qc = np.tile(_C_TABLE * factor, (hs // 8, ws // 8)).astype(np.float32)

    consts = [ly, ry, ily, iry, lc, rc, mcl, mcr,
              (1.0 / qy).astype(np.float32), qy,
              (1.0 / qc).astype(np.float32), qc]
    return [jnp.asarray(c, dtype=jnp.float32) for c in consts]


# --------------------------------------------------------------------------------
# Fused Pallas kernel: one (1, 3, strip_h, w_tile) image tile -> same-shaped output
# --------------------------------------------------------------------------------
def _diffjpeg_kernel(x_ref,
                     ly_ref, ry_ref, ily_ref, iry_ref,
                     lc_ref, rc_ref, mcl_ref, mcr_ref,
                     inv_qy_ref, qy_ref, inv_qc_ref, qc_ref,
                     o_ref):
    # ---- compress: RGB (*255) -> YCbCr ----
    r = x_ref[0, 0, :, :] * 255.0
    g = x_ref[0, 1, :, :] * 255.0
    b = x_ref[0, 2, :, :] * 255.0

    y = 0.299 * r + 0.587 * g + 0.114 * b
    cb = -0.168736 * r - 0.331264 * g + 0.5 * b + 128.0
    cr = 0.5 * r - 0.418688 * g - 0.081312 * b + 128.0

    def jpeg_plane(p, lmat, rmat, ilmat, irmat, inv_q_map, q_map):
        # (pool +) DCT of every 8x8 block, via block-diagonal matmuls (MXU).
        coef = jnp.dot(jnp.dot(lmat, p - 128.0, preferred_element_type=jnp.float32),
                       rmat, preferred_element_type=jnp.float32)
        # quantize + differentiable rounding + dequantize (VPU).
        qcoef = coef * inv_q_map
        rd = jnp.round(qcoef)
        qcoef = rd + (qcoef - rd) ** 3
        deq = qcoef * q_map
        # IDCT (+ upsample for chroma), +128.
        rec = jnp.dot(jnp.dot(ilmat, deq, preferred_element_type=jnp.float32),
                      irmat, preferred_element_type=jnp.float32)
        return rec + 128.0

    y_rec = jpeg_plane(y, ly_ref[...], ry_ref[...], ily_ref[...], iry_ref[...],
                       inv_qy_ref[...], qy_ref[...])
    cb_rec = jpeg_plane(cb, lc_ref[...], rc_ref[...], mcl_ref[...], mcr_ref[...],
                        inv_qc_ref[...], qc_ref[...])
    cr_rec = jpeg_plane(cr, lc_ref[...], rc_ref[...], mcl_ref[...], mcr_ref[...],
                        inv_qc_ref[...], qc_ref[...])

    # ---- decompress: YCbCr -> RGB, clamp [0, 255], /255 ----
    cbm = cb_rec - 128.0
    crm = cr_rec - 128.0
    inv255 = 1.0 / 255.0
    o_ref[0, 0, :, :] = jnp.clip(y_rec + 1.402 * crm, 0.0, 255.0) * inv255
    o_ref[0, 1, :, :] = jnp.clip(y_rec - 0.344136 * cbm - 0.714136 * crm,
                                 0.0, 255.0) * inv255
    o_ref[0, 2, :, :] = jnp.clip(y_rec + 1.772 * cbm, 0.0, 255.0) * inv255


# --------------------------------------------------------------------------------
# Full DiffJPEG_ forward
# --------------------------------------------------------------------------------
def diff_jpeg_forward(x, quality=80):
    """x: (B, 3, H, W) float32 in [0, 1]; returns (B, 3, H, W) float32 in [0, 1]."""
    B, C, H, W = x.shape
    assert C == 3 and H % 16 == 0 and W % 16 == 0
    factor = quality_to_factor(quality)

    strip_h = 16                                   # 2 luma / 1 chroma block rows
    w_tile = 128 if (W % 128 == 0) else W          # lane-dense tiles for real images
    consts = _build_constants(factor, strip_h, w_tile)

    grid = (B, H // strip_h, W // w_tile)
    io_spec = pl.BlockSpec((1, 3, strip_h, w_tile), lambda bi, si, wi: (bi, 0, si, wi))
    const_specs = [pl.BlockSpec(c.shape, lambda bi, si, wi: (0, 0)) for c in consts]

    out = pl.pallas_call(
        _diffjpeg_kernel,
        out_shape=jax.ShapeDtypeStruct((B, 3, H, W), jnp.float32),
        grid=grid,
        in_specs=[io_spec] + const_specs,
        out_specs=io_spec,
        compiler_params=pltpu.CompilerParams(
            # all grid axes are independent -> shard across TCs on v7x
            dimension_semantics=("parallel", "parallel", "parallel"),
            # tiles are <= 16x128 f32 (+ small constant matrices); explicit, safe on
            # v5e/v6e (128 MiB physical VMEM) and v7x (64 MiB).
            vmem_limit_bytes=32 * 1024 * 1024),
    )(x.astype(jnp.float32), *consts)
    return out


if __name__ == "__main__":
    key = jax.random.PRNGKey(0)
    x = jax.random.uniform(key, (2, 3, 16, 16), dtype=jnp.float32)
    out = jax.jit(diff_jpeg_forward)(x)
    out = jax.block_until_ready(out)
    assert out.shape == (2, 3, 16, 16)
    assert bool(jnp.all(jnp.isfinite(out)))
    print("KERNEL_OK")
</pallas_src>

<mosaic_0001>
module attributes {stable_mosaic.version = 11 : i64} {
  func.func @_diffjpeg_kernel(%arg0: i32, %arg1: i32, %arg2: i32, %arg3: memref<1x3x16x16xf32, #tpu.memory_space<vmem>>, %arg4: memref<16x16xf32, #tpu.memory_space<vmem>>, %arg5: memref<16x16xf32, #tpu.memory_space<vmem>>, %arg6: memref<16x16xf32, #tpu.memory_space<vmem>>, %arg7: memref<16x16xf32, #tpu.memory_space<vmem>>, %arg8: memref<8x16xf32, #tpu.memory_space<vmem>>, %arg9: memref<16x8xf32, #tpu.memory_space<vmem>>, %arg10: memref<16x8xf32, #tpu.memory_space<vmem>>, %arg11: memref<8x16xf32, #tpu.memory_space<vmem>>, %arg12: memref<16x16xf32, #tpu.memory_space<vmem>>, %arg13: memref<16x16xf32, #tpu.memory_space<vmem>>, %arg14: memref<8x8xf32, #tpu.memory_space<vmem>>, %arg15: memref<8x8xf32, #tpu.memory_space<vmem>>, %arg16: memref<1x3x16x16xf32, #tpu.memory_space<vmem>>) attributes {dimension_semantics = [#tpu.dimension_semantics<parallel>, #tpu.dimension_semantics<parallel>, #tpu.dimension_semantics<parallel>], iteration_bounds = array<i64: 2, 1, 1>, scalar_prefetch = 0 : i64, scratch_operands = 0 : i64, tpu.core_type = #tpu.core_type<tc>, window_params = [{transform_indices = @transform_0, window_bounds = array<i64: 1, 3, 16, 16>}, {pipeline_mode = #tpu.pipeline_mode<synchronous>, transform_indices = @transform_1, window_bounds = array<i64: 16, 16>}, {pipeline_mode = #tpu.pipeline_mode<synchronous>, transform_indices = @transform_2, window_bounds = array<i64: 16, 16>}, {pipeline_mode = #tpu.pipeline_mode<synchronous>, transform_indices = @transform_3, window_bounds = array<i64: 16, 16>}, {pipeline_mode = #tpu.pipeline_mode<synchronous>, transform_indices = @transform_4, window_bounds = array<i64: 16, 16>}, {pipeline_mode = #tpu.pipeline_mode<synchronous>, transform_indices = @transform_5, window_bounds = array<i64: 8, 16>}, {pipeline_mode = #tpu.pipeline_mode<synchronous>, transform_indices = @transform_6, window_bounds = array<i64: 16, 8>}, {pipeline_mode = #tpu.pipeline_mode<synchronous>, transform_indices = @transform_7, window_bounds = array<i64: 16, 8>}, {pipeline_mode = #tpu.pipeline_mode<synchronous>, transform_indices = @transform_8, window_bounds = array<i64: 8, 16>}, {pipeline_mode = #tpu.pipeline_mode<synchronous>, transform_indices = @transform_9, window_bounds = array<i64: 16, 16>}, {pipeline_mode = #tpu.pipeline_mode<synchronous>, transform_indices = @transform_10, window_bounds = array<i64: 16, 16>}, {pipeline_mode = #tpu.pipeline_mode<synchronous>, transform_indices = @transform_11, window_bounds = array<i64: 8, 8>}, {pipeline_mode = #tpu.pipeline_mode<synchronous>, transform_indices = @transform_12, window_bounds = array<i64: 8, 8>}, {transform_indices = @transform_13, window_bounds = array<i64: 1, 3, 16, 16>}]} {
    %c0 = arith.constant 0 : index
    %c0_0 = arith.constant 0 : index
    %c0_1 = arith.constant 0 : index
    %c0_2 = arith.constant 0 : index
    %0 = vector.load %arg3[%c0, %c0_0, %c0_1, %c0_2] : memref<1x3x16x16xf32, #tpu.memory_space<vmem>>, vector<1x1x16x16xf32>
    %1 = vector.shape_cast %0 : vector<1x1x16x16xf32> to vector<16x16xf32>
    %cst = arith.constant 2.550000e+02 : f32
    %2 = vector.broadcast %cst : f32 to vector<16x16xf32>
    %3 = arith.mulf %1, %2 : vector<16x16xf32>
    %c0_3 = arith.constant 0 : index
    %c1 = arith.constant 1 : index
    %c0_4 = arith.constant 0 : index
    %c0_5 = arith.constant 0 : index
    %4 = vector.load %arg3[%c0_3, %c1, %c0_4, %c0_5] : memref<1x3x16x16xf32, #tpu.memory_space<vmem>>, vector<1x1x16x16xf32>
    %5 = vector.shape_cast %4 : vector<1x1x16x16xf32> to vector<16x16xf32>
    %cst_6 = arith.constant 2.550000e+02 : f32
    %6 = vector.broadcast %cst_6 : f32 to vector<16x16xf32>
    %7 = arith.mulf %5, %6 : vector<16x16xf32>
    %c0_7 = arith.constant 0 : index
    %c2 = arith.constant 2 : index
    %c0_8 = arith.constant 0 : index
    %c0_9 = arith.constant 0 : index
    %8 = vector.load %arg3[%c0_7, %c2, %c0_8, %c0_9] : memref<1x3x16x16xf32, #tpu.memory_space<vmem>>, vector<1x1x16x16xf32>
    %9 = vector.shape_cast %8 : vector<1x1x16x16xf32> to vector<16x16xf32>
    %cst_10 = arith.constant 2.550000e+02 : f32
    %10 = vector.broadcast %cst_10 : f32 to vector<16x16xf32>
    %11 = arith.mulf %9, %10 : vector<16x16xf32>
    %cst_11 = arith.constant 2.990000e-01 : f32
    %12 = vector.broadcast %cst_11 : f32 to vector<16x16xf32>
    %13 = arith.mulf %12, %3 : vector<16x16xf32>
    %cst_12 = arith.constant 5.870000e-01 : f32
    %14 = vector.broadcast %cst_12 : f32 to vector<16x16xf32>
    %15 = arith.mulf %14, %7 : vector<16x16xf32>
    %16 = arith.addf %13, %15 : vector<16x16xf32>
    %cst_13 = arith.constant 1.140000e-01 : f32
    %17 = vector.broadcast %cst_13 : f32 to vector<16x16xf32>
    %18 = arith.mulf %17, %11 : vector<16x16xf32>
    %19 = arith.addf %16, %18 : vector<16x16xf32>
    %cst_14 = arith.constant -1.687360e-01 : f32
    %20 = vector.broadcast %cst_14 : f32 to vector<16x16xf32>
    %21 = arith.mulf %20, %3 : vector<16x16xf32>
    %cst_15 = arith.constant 3.312640e-01 : f32
    %22 = vector.broadcast %cst_15 : f32 to vector<16x16xf32>
    %23 = arith.mulf %22, %7 : vector<16x16xf32>
    %24 = arith.subf %21, %23 : vector<16x16xf32>
    %cst_16 = arith.constant 5.000000e-01 : f32
    %25 = vector.broadcast %cst_16 : f32 to vector<16x16xf32>
    %26 = arith.mulf %25, %11 : vector<16x16xf32>
    %27 = arith.addf %24, %26 : vector<16x16xf32>
    %cst_17 = arith.constant 1.280000e+02 : f32
    %28 = vector.broadcast %cst_17 : f32 to vector<16x16xf32>
    %29 = arith.addf %27, %28 : vector<16x16xf32>
    %cst_18 = arith.constant 5.000000e-01 : f32
    %30 = vector.broadcast %cst_18 : f32 to vector<16x16xf32>
    %31 = arith.mulf %30, %3 : vector<16x16xf32>
    %cst_19 = arith.constant 4.186880e-01 : f32
    %32 = vector.broadcast %cst_19 : f32 to vector<16x16xf32>
    %33 = arith.mulf %32, %7 : vector<16x16xf32>
    %34 = arith.subf %31, %33 : vector<16x16xf32>
    %cst_20 = arith.constant 8.131200e-02 : f32
    %35 = vector.broadcast %cst_20 : f32 to vector<16x16xf32>
    %36 = arith.mulf %35, %11 : vector<16x16xf32>
    %37 = arith.subf %34, %36 : vector<16x16xf32>
    %cst_21 = arith.constant 1.280000e+02 : f32
    %38 = vector.broadcast %cst_21 : f32 to vector<16x16xf32>
    %39 = arith.addf %37, %38 : vector<16x16xf32>
    %c0_22 = arith.constant 0 : index
    %c0_23 = arith.constant 0 : index
    %40 = vector.load %arg4[%c0_22, %c0_23] : memref<16x16xf32, #tpu.memory_space<vmem>>, vector<16x16xf32>
    %c0_24 = arith.constant 0 : index
    %c0_25 = arith.constant 0 : index
    %41 = vector.load %arg5[%c0_24, %c0_25] : memref<16x16xf32, #tpu.memory_space<vmem>>, vector<16x16xf32>
    %c0_26 = arith.constant 0 : index
    %c0_27 = arith.constant 0 : index
    %42 = vector.load %arg6[%c0_26, %c0_27] : memref<16x16xf32, #tpu.memory_space<vmem>>, vector<16x16xf32>
    %c0_28 = arith.constant 0 : index
    %c0_29 = arith.constant 0 : index
    %43 = vector.load %arg7[%c0_28, %c0_29] : memref<16x16xf32, #tpu.memory_space<vmem>>, vector<16x16xf32>
    %c0_30 = arith.constant 0 : index
    %c0_31 = arith.constant 0 : index
    %44 = vector.load %arg12[%c0_30, %c0_31] : memref<16x16xf32, #tpu.memory_space<vmem>>, vector<16x16xf32>
    %c0_32 = arith.constant 0 : index
    %c0_33 = arith.constant 0 : index
    %45 = vector.load %arg13[%c0_32, %c0_33] : memref<16x16xf32, #tpu.memory_space<vmem>>, vector<16x16xf32>
    %cst_34 = arith.constant 1.280000e+02 : f32
    %46 = vector.broadcast %cst_34 : f32 to vector<16x16xf32>
    %47 = arith.subf %19, %46 : vector<16x16xf32>
    %cst_35 = arith.constant dense<0.000000e+00> : vector<16x16xf32>
    %48 = tpu.matmul %40, %47, %cst_35 {dimension_numbers = #tpu.dot_dimension_numbers<[1], [0], [0], [1], [0, 0, 1, 1], [], []>} : vector<16x16xf32>, vector<16x16xf32>, vector<16x16xf32> -> vector<16x16xf32>
    %cst_36 = arith.constant dense<0.000000e+00> : vector<16x16xf32>
    %49 = tpu.matmul %48, %41, %cst_36 {dimension_numbers = #tpu.dot_dimension_numbers<[1], [0], [0], [1], [0, 0, 1, 1], [], []>} : vector<16x16xf32>, vector<16x16xf32>, vector<16x16xf32> -> vector<16x16xf32>
    %50 = arith.mulf %49, %44 : vector<16x16xf32>
    %51 = math.roundeven %50 : vector<16x16xf32>
    %52 = arith.subf %50, %51 : vector<16x16xf32>
    %53 = arith.mulf %52, %52 : vector<16x16xf32>
    %54 = arith.mulf %52, %53 : vector<16x16xf32>
    %55 = arith.addf %51, %54 : vector<16x16xf32>
    %56 = arith.mulf %55, %45 : vector<16x16xf32>
    %cst_37 = arith.constant dense<0.000000e+00> : vector<16x16xf32>
    %57 = tpu.matmul %42, %56, %cst_37 {dimension_numbers = #tpu.dot_dimension_numbers<[1], [0], [0], [1], [0, 0, 1, 1], [], []>} : vector<16x16xf32>, vector<16x16xf32>, vector<16x16xf32> -> vector<16x16xf32>
    %cst_38 = arith.constant dense<0.000000e+00> : vector<16x16xf32>
    %58 = tpu.matmul %57, %43, %cst_38 {dimension_numbers = #tpu.dot_dimension_numbers<[1], [0], [0], [1], [0, 0, 1, 1], [], []>} : vector<16x16xf32>, vector<16x16xf32>, vector<16x16xf32> -> vector<16x16xf32>
    %cst_39 = arith.constant 1.280000e+02 : f32
    %59 = vector.broadcast %cst_39 : f32 to vector<16x16xf32>
    %60 = arith.addf %58, %59 : vector<16x16xf32>
    %c0_40 = arith.constant 0 : index
    %c0_41 = arith.constant 0 : index
    %61 = vector.load %arg8[%c0_40, %c0_41] : memref<8x16xf32, #tpu.memory_space<vmem>>, vector<8x16xf32>
    %c0_42 = arith.constant 0 : index
    %c0_43 = arith.constant 0 : index
    %62 = vector.load %arg9[%c0_42, %c0_43] : memref<16x8xf32, #tpu.memory_space<vmem>>, vector<16x8xf32>
    %c0_44 = arith.constant 0 : index
    %c0_45 = arith.constant 0 : index
    %63 = vector.load %arg10[%c0_44, %c0_45] : memref<16x8xf32, #tpu.memory_space<vmem>>, vector<16x8xf32>
    %c0_46 = arith.constant 0 : index
    %c0_47 = arith.constant 0 : index
    %64 = vector.load %arg11[%c0_46, %c0_47] : memref<8x16xf32, #tpu.memory_space<vmem>>, vector<8x16xf32>
    %c0_48 = arith.constant 0 : index
    %c0_49 = arith.constant 0 : index
    %65 = vector.load %arg14[%c0_48, %c0_49] : memref<8x8xf32, #tpu.memory_space<vmem>>, vector<8x8xf32>
    %c0_50 = arith.constant 0 : index
    %c0_51 = arith.constant 0 : index
    %66 = vector.load %arg15[%c0_50, %c0_51] : memref<8x8xf32, #tpu.memory_space<vmem>>, vector<8x8xf32>
    %cst_52 = arith.constant 1.280000e+02 : f32
    %67 = vector.broadcast %cst_52 : f32 to vector<16x16xf32>
    %68 = arith.subf %29, %67 : vector<16x16xf32>
    %cst_53 = arith.constant dense<0.000000e+00> : vector<8x16xf32>
    %69 = tpu.matmul %61, %68, %cst_53 {dimension_numbers = #tpu.dot_dimension_numbers<[1], [0], [0], [1], [0, 0, 1, 1], [], []>} : vector<8x16xf32>, vector<16x16xf32>, vector<8x16xf32> -> vector<8x16xf32>
    %cst_54 = arith.constant dense<0.000000e+00> : vector<8x8xf32>
    %70 = tpu.matmul %69, %62, %cst_54 {dimension_numbers = #tpu.dot_dimension_numbers<[1], [0], [0], [1], [0, 0, 1, 1], [], []>} : vector<8x16xf32>, vector<16x8xf32>, vector<8x8xf32> -> vector<8x8xf32>
    %71 = arith.mulf %70, %65 : vector<8x8xf32>
    %72 = math.roundeven %71 : vector<8x8xf32>
    %73 = arith.subf %71, %72 : vector<8x8xf32>
    %74 = arith.mulf %73, %73 : vector<8x8xf32>
    %75 = arith.mulf %73, %74 : vector<8x8xf32>
    %76 = arith.addf %72, %75 : vector<8x8xf32>
    %77 = arith.mulf %76, %66 : vector<8x8xf32>
    %cst_55 = arith.constant dense<0.000000e+00> : vector<16x8xf32>
    %78 = tpu.matmul %63, %77, %cst_55 {dimension_numbers = #tpu.dot_dimension_numbers<[1], [0], [0], [1], [0, 0, 1, 1], [], []>} : vector<16x8xf32>, vector<8x8xf32>, vector<16x8xf32> -> vector<16x8xf32>
    %cst_56 = arith.constant dense<0.000000e+00> : vector<16x16xf32>
    %79 = tpu.matmul %78, %64, %cst_56 {dimension_numbers = #tpu.dot_dimension_numbers<[1], [0], [0], [1], [0, 0, 1, 1], [], []>} : vector<16x8xf32>, vector<8x16xf32>, vector<16x16xf32> -> vector<16x16xf32>
    %cst_57 = arith.constant 1.280000e+02 : f32
    %80 = vector.broadcast %cst_57 : f32 to vector<16x16xf32>
    %81 = arith.addf %79, %80 : vector<16x16xf32>
    %c0_58 = arith.constant 0 : index
    %c0_59 = arith.constant 0 : index
    %82 = vector.load %arg8[%c0_58, %c0_59] : memref<8x16xf32, #tpu.memory_space<vmem>>, vector<8x16xf32>
    %c0_60 = arith.constant 0 : index
    %c0_61 = arith.constant 0 : index
    %83 = vector.load %arg9[%c0_60, %c0_61] : memref<16x8xf32, #tpu.memory_space<vmem>>, vector<16x8xf32>
    %c0_62 = arith.constant 0 : index
    %c0_63 = arith.constant 0 : index
    %84 = vector.load %arg10[%c0_62, %c0_63] : memref<16x8xf32, #tpu.memory_space<vmem>>, vector<16x8xf32>
    %c0_64 = arith.constant 0 : index
    %c0_65 = arith.constant 0 : index
    %85 = vector.load %arg11[%c0_64, %c0_65] : memref<8x16xf32, #tpu.memory_space<vmem>>, vector<8x16xf32>
    %c0_66 = arith.constant 0 : index
    %c0_67 = arith.constant 0 : index
    %86 = vector.load %arg14[%c0_66, %c0_67] : memref<8x8xf32, #tpu.memory_space<vmem>>, vector<8x8xf32>
    %c0_68 = arith.constant 0 : index
    %c0_69 = arith.constant 0 : index
    %87 = vector.load %arg15[%c0_68, %c0_69] : memref<8x8xf32, #tpu.memory_space<vmem>>, vector<8x8xf32>
    %cst_70 = arith.constant 1.280000e+02 : f32
    %88 = vector.broadcast %cst_70 : f32 to vector<16x16xf32>
    %89 = arith.subf %39, %88 : vector<16x16xf32>
    %cst_71 = arith.constant dense<0.000000e+00> : vector<8x16xf32>
    %90 = tpu.matmul %82, %89, %cst_71 {dimension_numbers = #tpu.dot_dimension_numbers<[1], [0], [0], [1], [0, 0, 1, 1], [], []>} : vector<8x16xf32>, vector<16x16xf32>, vector<8x16xf32> -> vector<8x16xf32>
    %cst_72 = arith.constant dense<0.000000e+00> : vector<8x8xf32>
    %91 = tpu.matmul %90, %83, %cst_72 {dimension_numbers = #tpu.dot_dimension_numbers<[1], [0], [0], [1], [0, 0, 1, 1], [], []>} : vector<8x16xf32>, vector<16x8xf32>, vector<8x8xf32> -> vector<8x8xf32>
    %92 = arith.mulf %91, %86 : vector<8x8xf32>
    %93 = math.roundeven %92 : vector<8x8xf32>
    %94 = arith.subf %92, %93 : vector<8x8xf32>
    %95 = arith.mulf %94, %94 : vector<8x8xf32>
    %96 = arith.mulf %94, %95 : vector<8x8xf32>
    %97 = arith.addf %93, %96 : vector<8x8xf32>
    %98 = arith.mulf %97, %87 : vector<8x8xf32>
    %cst_73 = arith.constant dense<0.000000e+00> : vector<16x8xf32>
    %99 = tpu.matmul %84, %98, %cst_73 {dimension_numbers = #tpu.dot_dimension_numbers<[1], [0], [0], [1], [0, 0, 1, 1], [], []>} : vector<16x8xf32>, vector<8x8xf32>, vector<16x8xf32> -> vector<16x8xf32>
    %cst_74 = arith.constant dense<0.000000e+00> : vector<16x16xf32>
    %100 = tpu.matmul %99, %85, %cst_74 {dimension_numbers = #tpu.dot_dimension_numbers<[1], [0], [0], [1], [0, 0, 1, 1], [], []>} : vector<16x8xf32>, vector<8x16xf32>, vector<16x16xf32> -> vector<16x16xf32>
    %cst_75 = arith.constant 1.280000e+02 : f32
    %101 = vector.broadcast %cst_75 : f32 to vector<16x16xf32>
    %102 = arith.addf %100, %101 : vector<16x16xf32>
    %cst_76 = arith.constant 1.280000e+02 : f32
    %103 = vector.broadcast %cst_76 : f32 to vector<16x16xf32>
    %104 = arith.subf %81, %103 : vector<16x16xf32>
    %cst_77 = arith.constant 1.280000e+02 : f32
    %105 = vector.broadcast %cst_77 : f32 to vector<16x16xf32>
    %106 = arith.subf %102, %105 : vector<16x16xf32>
    %cst_78 = arith.constant 1.402000e+00 : f32
    %107 = vector.broadcast %cst_78 : f32 to vector<16x16xf32>
    %108 = arith.mulf %107, %106 : vector<16x16xf32>
    %109 = arith.addf %60, %108 : vector<16x16xf32>
    %cst_79 = arith.constant 0.000000e+00 : f32
    %cst_80 = arith.constant 2.550000e+02 : f32
    %110 = vector.broadcast %cst_79 : f32 to vector<16x16xf32>
    %111 = arith.maximumf %110, %109 : vector<16x16xf32>
    %112 = vector.broadcast %cst_80 : f32 to vector<16x16xf32>
    %113 = arith.minimumf %112, %111 : vector<16x16xf32>
    %cst_81 = arith.constant 0.00392156886 : f32
    %114 = vector.broadcast %cst_81 : f32 to vector<16x16xf32>
    %115 = arith.mulf %113, %114 : vector<16x16xf32>
    %c0_82 = arith.constant 0 : index
    %c0_83 = arith.constant 0 : index
    %c0_84 = arith.constant 0 : index
    %c0_85 = arith.constant 0 : index
    %116 = vector.load %arg16[%c0_82, %c0_83, %c0_84, %c0_85] : memref<1x3x16x16xf32, #tpu.memory_space<vmem>>, vector<1x1x16x16xf32>
    %117 = vector.shape_cast %116 : vector<1x1x16x16xf32> to vector<16x16xf32>
    %118 = vector.shape_cast %115 : vector<16x16xf32> to vector<1x1x16x16xf32>
    tpu.vector_store %arg16[%c0_82, %c0_83, %c0_84, %c0_85], %118 {strides = array<i32>} : memref<1x3x16x16xf32, #tpu.memory_space<vmem>>, vector<1x1x16x16xf32>,
    %cst_86 = arith.constant 3.441360e-01 : f32
    %119 = vector.broadcast %cst_86 : f32 to vector<16x16xf32>
    %120 = arith.mulf %119, %104 : vector<16x16xf32>
    %121 = arith.subf %60, %120 : vector<16x16xf32>
    %cst_87 = arith.constant 7.141360e-01 : f32
    %122 = vector.broadcast %cst_87 : f32 to vector<16x16xf32>
    %123 = arith.mulf %122, %106 : vector<16x16xf32>
    %124 = arith.subf %121, %123 : vector<16x16xf32>
    %cst_88 = arith.constant 0.000000e+00 : f32
    %cst_89 = arith.constant 2.550000e+02 : f32
    %125 = vector.broadcast %cst_88 : f32 to vector<16x16xf32>
    %126 = arith.maximumf %125, %124 : vector<16x16xf32>
    %127 = vector.broadcast %cst_89 : f32 to vector<16x16xf32>
    %128 = arith.minimumf %127, %126 : vector<16x16xf32>
    %cst_90 = arith.constant 0.00392156886 : f32
    %129 = vector.broadcast %cst_90 : f32 to vector<16x16xf32>
    %130 = arith.mulf %128, %129 : vector<16x16xf32>
    %c0_91 = arith.constant 0 : index
    %c1_92 = arith.constant 1 : index
    %c0_93 = arith.constant 0 : index
    %c0_94 = arith.constant 0 : index
    %131 = vector.load %arg16[%c0_91, %c1_92, %c0_93, %c0_94] : memref<1x3x16x16xf32, #tpu.memory_space<vmem>>, vector<1x1x16x16xf32>
    %132 = vector.shape_cast %131 : vector<1x1x16x16xf32> to vector<16x16xf32>
    %133 = vector.shape_cast %130 : vector<16x16xf32> to vector<1x1x16x16xf32>
    tpu.vector_store %arg16[%c0_91, %c1_92, %c0_93, %c0_94], %133 {strides = array<i32>} : memref<1x3x16x16xf32, #tpu.memory_space<vmem>>, vector<1x1x16x16xf32>,
    %cst_95 = arith.constant 1.772000e+00 : f32
    %134 = vector.broadcast %cst_95 : f32 to vector<16x16xf32>
    %135 = arith.mulf %134, %104 : vector<16x16xf32>
    %136 = arith.addf %60, %135 : vector<16x16xf32>
    %cst_96 = arith.constant 0.000000e+00 : f32
    %cst_97 = arith.constant 2.550000e+02 : f32
    %137 = vector.broadcast %cst_96 : f32 to vector<16x16xf32>
    %138 = arith.maximumf %137, %136 : vector<16x16xf32>
    %139 = vector.broadcast %cst_97 : f32 to vector<16x16xf32>
    %140 = arith.minimumf %139, %138 : vector<16x16xf32>
    %cst_98 = arith.constant 0.00392156886 : f32
    %141 = vector.broadcast %cst_98 : f32 to vector<16x16xf32>
    %142 = arith.mulf %140, %141 : vector<16x16xf32>
    %c0_99 = arith.constant 0 : index
    %c2_100 = arith.constant 2 : index
    %c0_101 = arith.constant 0 : index
    %c0_102 = arith.constant 0 : index
    %143 = vector.load %arg16[%c0_99, %c2_100, %c0_101, %c0_102] : memref<1x3x16x16xf32, #tpu.memory_space<vmem>>, vector<1x1x16x16xf32>
    %144 = vector.shape_cast %143 : vector<1x1x16x16xf32> to vector<16x16xf32>
    %145 = vector.shape_cast %142 : vector<16x16xf32> to vector<1x1x16x16xf32>
    tpu.vector_store %arg16[%c0_99, %c2_100, %c0_101, %c0_102], %145 {strides = array<i32>} : memref<1x3x16x16xf32, #tpu.memory_space<vmem>>, vector<1x1x16x16xf32>,
    return
  }
  func.func @transform_0(%arg0: i32, %arg1: i32, %arg2: i32) -> (i32, i32, i32, i32) {
    %c0_i32 = arith.constant 0 : i32
    %c0_i32_0 = arith.constant 0 : i32
    return %arg0, %c0_i32, %arg1, %arg2 : i32, i32, i32, i32
  }
  func.func @transform_1(%arg0: i32, %arg1: i32, %arg2: i32) -> (i32, i32) {
    %c0_i32 = arith.constant 0 : i32
    %c0_i32_0 = arith.constant 0 : i32
    %c0_i32_1 = arith.constant 0 : i32
    return %c0_i32, %c0_i32_0 : i32, i32
  }
  func.func @transform_2(%arg0: i32, %arg1: i32, %arg2: i32) -> (i32, i32) {
    %c0_i32 = arith.constant 0 : i32
    %c0_i32_0 = arith.constant 0 : i32
    %c0_i32_1 = arith.constant 0 : i32
    return %c0_i32, %c0_i32_0 : i32, i32
  }
  func.func @transform_3(%arg0: i32, %arg1: i32, %arg2: i32) -> (i32, i32) {
    %c0_i32 = arith.constant 0 : i32
    %c0_i32_0 = arith.constant 0 : i32
    %c0_i32_1 = arith.constant 0 : i32
    return %c0_i32, %c0_i32_0 : i32, i32
  }
  func.func @transform_4(%arg0: i32, %arg1: i32, %arg2: i32) -> (i32, i32) {
    %c0_i32 = arith.constant 0 : i32
    %c0_i32_0 = arith.constant 0 : i32
    %c0_i32_1 = arith.constant 0 : i32
    return %c0_i32, %c0_i32_0 : i32, i32
  }
  func.func @transform_5(%arg0: i32, %arg1: i32, %arg2: i32) -> (i32, i32) {
    %c0_i32 = arith.constant 0 : i32
    %c0_i32_0 = arith.constant 0 : i32
    %c0_i32_1 = arith.constant 0 : i32
    return %c0_i32, %c0_i32_0 : i32, i32
  }
  func.func @transform_6(%arg0: i32, %arg1: i32, %arg2: i32) -> (i32, i32) {
    %c0_i32 = arith.constant 0 : i32
    %c0_i32_0 = arith.constant 0 : i32
    %c0_i32_1 = arith.constant 0 : i32
    return %c0_i32, %c0_i32_0 : i32, i32
  }
  func.func @transform_7(%arg0: i32, %arg1: i32, %arg2: i32) -> (i32, i32) {
    %c0_i32 = arith.constant 0 : i32
    %c0_i32_0 = arith.constant 0 : i32
    %c0_i32_1 = arith.constant 0 : i32
    return %c0_i32, %c0_i32_0 : i32, i32
  }
  func.func @transform_8(%arg0: i32, %arg1: i32, %arg2: i32) -> (i32, i32) {
    %c0_i32 = arith.constant 0 : i32
    %c0_i32_0 = arith.constant 0 : i32
    %c0_i32_1 = arith.constant 0 : i32
    return %c0_i32, %c0_i32_0 : i32, i32
  }
  func.func @transform_9(%arg0: i32, %arg1: i32, %arg2: i32) -> (i32, i32) {
    %c0_i32 = arith.constant 0 : i32
    %c0_i32_0 = arith.constant 0 : i32
    %c0_i32_1 = arith.constant 0 : i32
    return %c0_i32, %c0_i32_0 : i32, i32
  }
  func.func @transform_10(%arg0: i32, %arg1: i32, %arg2: i32) -> (i32, i32) {
    %c0_i32 = arith.constant 0 : i32
    %c0_i32_0 = arith.constant 0 : i32
    %c0_i32_1 = arith.constant 0 : i32
    return %c0_i32, %c0_i32_0 : i32, i32
  }
  func.func @transform_11(%arg0: i32, %arg1: i32, %arg2: i32) -> (i32, i32) {
    %c0_i32 = arith.constant 0 : i32
    %c0_i32_0 = arith.constant 0 : i32
    %c0_i32_1 = arith.constant 0 : i32
    return %c0_i32, %c0_i32_0 : i32, i32
  }
  func.func @transform_12(%arg0: i32, %arg1: i32, %arg2: i32) -> (i32, i32) {
    %c0_i32 = arith.constant 0 : i32
    %c0_i32_0 = arith.constant 0 : i32
    %c0_i32_1 = arith.constant 0 : i32
    return %c0_i32, %c0_i32_0 : i32, i32
  }
  func.func @transform_13(%arg0: i32, %arg1: i32, %arg2: i32) -> (i32, i32, i32, i32) {
    %c0_i32 = arith.constant 0 : i32
    %c0_i32_0 = arith.constant 0 : i32
    return %arg0, %c0_i32, %arg1, %arg2 : i32, i32, i32, i32
  }
}

</mosaic_0001>

<bundles_post_ra>
// kernel: diff_jpeg_forward.1
= control target key start
LH: loop header
LB: loop body
LE: loop exit
PB: predicated region body
PF: predicated region fallthrough
CT: control target
= control target key end

     0   :  { %s3264_s0 = inlined_call_operand.hbm [shape: f32[2,3,16,16], index: 0, kind: input, shape index: {}]   ;;  %s3265_s1 = inlined_call_operand.hbm [shape: f32[16,16], index: 1, kind: input, shape index: {}, may-alias: {1,4}]   ;;  %s3266_s2 = inlined_call_operand.hbm [shape: f32[16,16], index: 2, kind: input, shape index: {}, may-alias: {2,3}]   ;;  %s3267_s3 = inlined_call_operand.hbm [shape: f32[16,16], index: 3, kind: input, shape index: {}, may-alias: {2,3}]   ;;  %s3268_s4 = inlined_call_operand.hbm [shape: f32[16,16], index: 4, kind: input, shape index: {}, may-alias: {1,4}]   ;;  %s3269_s5 = inlined_call_operand.hbm [shape: f32[8,16], index: 5, kind: input, shape index: {}]   ;;  %s3270_s6 = inlined_call_operand.hbm [shape: f32[16,8], index: 6, kind: input, shape index: {}]   ;;  %s3271_s7 = inlined_call_operand.hbm [shape: f32[16,8], index: 7, kind: input, shape index: {}]   ;;  %s3272_s8 = inlined_call_operand.hbm [shape: f32[8,16], index: 8, kind: input, shape index: {}]   ;;  %s3273_s9 = inlined_call_operand.hbm [shape: f32[16,16], index: 9, kind: input, shape index: {}]   ;;  %s3274_s10 = inlined_call_operand.vmem [shape: f32[16,16], index: 10, kind: input, shape index: {}]   ;;  %s3275_s11 = inlined_call_operand.vmem [shape: f32[8,8], index: 11, kind: input, shape index: {}]   ;;  %s3276_s12 = inlined_call_operand.vmem [shape: f32[8,8], index: 12, kind: input, shape index: {}]   ;;  %s3277_s13 = inlined_call_operand.hbm [shape: f32[2,3,16,16], index: 13, kind: output, shape index: {}]  }
   0x1   :  { %3290 = sst [smem:[#allocation29_spill]] %s3264_s0 }
   0x2   :  { %3291 = sst [smem:[#allocation30_spill]] %s3265_s1 }
   0x3   :  { %3292 = sst [smem:[#allocation31_spill]] %s3266_s2 }
   0x4   :  { %3293 = sst [smem:[#allocation32_spill]] %s3267_s3 }
   0x5   :  { %3294 = sst [smem:[#allocation33_spill]] %s3268_s4 }
   0x6   :  { %3295 = sst [smem:[#allocation34_spill]] %s3274_s10 }
   0x7   :  { %3296 = sst [smem:[#allocation35_spill]] %s3275_s11 }
   0x8   :  { %3297 = sst [smem:[#allocation36_spill]] %s3276_s12 }
   0x9   :  { %3298 = sst [smem:[#allocation37_spill]] %s3277_s13 }
   0xa   :  { %18 = vsyncpa [#allocation3], 0 }
   0xb   :  { %20 = vsyncpa [#allocation3 + $0x1], 0 }
   0xc   :  { %21 = vsyncpa [#allocation6], 0 }
   0xd   :  { %22 = vsyncpa [#allocation9], 0 }
   0xe   :  { %23 = vsyncpa [#allocation12], 0 }
   0xf   :  { %24 = vsyncpa [#allocation15], 0 }
  0x10   :  { %25 = vsyncpa [#allocation18], 0 }
  0x11   :  { %26 = vsyncpa [#allocation4], 0 }
  0x12   :  { %28 = vsyncpa [#allocation4 + $0x1], 0  ;;  %s2745_s25 = smov 0   ;;  %s2747_s26 = smov 0  }
  0x13   :  { %s2749_s27 = smov 0   ;;  %s2751_s28 = smov 0  }
  0x14   :  { %s2753_s29 = smov 0   ;;  %s2755_s30 = smov 0  }
  0x15 LB: > { %3299 = sst [smem:[#allocation27_spill]] %s2647_s28  ;;  %s3278_s14 = sadd.s32 4294967295, %s2655_s30   ;;  %s2655_s30 = sphi %s2755_s30, %s34_s30   ;;  %s2651_s29 = sphi %s2753_s29, %s3334_s29   ;;  %s2647_s28 = sphi %s2751_s28, %s3333_s28   ;;  %s2643_s27 = sphi %s2749_s27, %s3332_s27   ;;  %s2639_s26 = sphi %s2747_s26, %s3331_s26   ;;  %s2635_s25 = sphi %s2745_s25, %s3330_s25  }
  0x16   : > { %p1896_p0 = scmp.ge.s32.totalorder %s2655_s30, 1  ;;  %p2779_p1 = scmp.eq.s32.totalorder %s3278_s14, 0 }
  0x17   : > { %p370_p2 = scmp.lt.s32.totalorder %s2655_s30, 3  ;;  %s2657_s17 = smov [#allocation5]  }
  0x18   : > { %s3300_s15 = scalar_select %p2779_p1, 1, 0 }
  0x19   : > { %p2784_p3 = pnand %p1896_p0, %p370_p2  ;;  %s382_s18 = sshll.u32 %s2657_s17, 4  ;;  %s2788_s18 = int_to_ptr.vmem [resolvable:$true] %s382_s18 }
  0x1a   : > { %s2658_s20 = smov [#allocation8]   ;;  %s2659_s22 = smov [#allocation11]  }
  0x1b   : > { %s3301_s16 = scalar_select %p2784_p3, 1, 0 }
  0x1c   : > { %p2151_p4 = pneg %p2784_p3  ;;  %s408_s21 = sshll.u32 %s2658_s20, 4  ;;  %s2799_s21 = int_to_ptr.vmem [resolvable:$true] %s408_s21 }
  0x1d   : > { %3302 = sst [smem:[#allocation28_spill]] %s3301_s16  ;;  %s2801_s23 = sshll.u32 %s2659_s22, 4  ;;  %s436_s23 = int_to_ptr.vmem [resolvable:$true] %s2801_s23 }
  0x1e   : > { %p2795_p6 = pnand %p2151_p4, %p2779_p1  ;;  %s3304_s1 = sld [smem:[#allocation30_spill]] }
  0x20   : > { %p2811_p8 = pneg %p2795_p6 }
  0x24   : > { %s2271_s14 = scalar_lea.hbm %s3304_s1, 256 }
  0x25   : > { %p2272_p7 = scmp.ne.s32.totalorder %s3304_s1, %s2271_s14  ;;  %p2278_p11 = scmp.lt.u32.totalorder %s2271_s14, %s3304_s1 }
  0x27   : > { %p2274_p9 = pnand %p2811_p8, %p2272_p7 }
  0x29   : > { %p2275_p10 = pneg %p2274_p9 }
  0x2b   : > { %p2280_p12 = pnand %p2278_p11, %p2275_p10 }
  0x2d   : > { %2283 = shalt.err (!%p2280_p12)
}
  0x2e   : > { %s2284_s13 = scalar_lea.vmem %s2788_s18, 256  ;;  %p2292_p4 = scmp.lt.s32.totalorder %s2788_s18, %s2788_s18 }
  0x2f   : > { %p2285_p13 = scmp.ne.s32.totalorder %s2788_s18, %s2284_s13  ;;  %p2293_p5 = scmp.lt.s32.totalorder %s2284_s13, %s2284_s13 }
  0x31   : > { %p2287_p0 = pnand %p2285_p13, %p2811_p8  ;;  %p2294_p7 = por %p2293_p5, %p2292_p4 }
  0x33   : > { %p2288_p2 = pneg %p2287_p0 }
  0x35   : > { %p2295_p9 = pnand %p2294_p7, %p2288_p2 }
  0x37   : > { %2298 = shalt.err (!%p2295_p9)
}
  0x38   : > { %s3286_s28 = smov 128   ;;  %s3288_s14 = smov 8  }
  0x39   : > { %2154 = dma.hbm_to_vmem [thread:$0]  (!%p2795_p6), %s3304_s1, 256, %s2788_s18, [#allocation6], %s3286_s28, %s3286_s28, %s3288_s14  }
  0x3a   : > { %s3306_s3 = sld [smem:[#allocation32_spill]] }
  0x40   : > { %s2299_s13 = scalar_lea.hbm %s3306_s3, 256 }
  0x41   : > { %p2300_p5 = scmp.ne.s32.totalorder %s3306_s3, %s2299_s13  ;;  %p2306_p12 = scmp.lt.u32.totalorder %s2299_s13, %s3306_s3 }
  0x43   : > { %p2302_p10 = pnand %p2300_p5, %p2811_p8 }
  0x45   : > { %p2303_p11 = pneg %p2302_p10 }
  0x47   : > { %p2308_p13 = pnand %p2306_p12, %p2303_p11 }
  0x49   : > { %2311 = shalt.err (!%p2308_p13)
}
  0x4a   : > { %s2312_s18 = scalar_lea.vmem %s2799_s21, 256  ;;  %p2320_p7 = scmp.lt.s32.totalorder %s2799_s21, %s2799_s21 }
  0x4b   : > { %p2313_p0 = scmp.ne.s32.totalorder %s2799_s21, %s2312_s18  ;;  %p2321_p9 = scmp.lt.s32.totalorder %s2312_s18, %s2312_s18 }
  0x4d   : > { %p2315_p2 = pnand %p2313_p0, %p2811_p8  ;;  %p2322_p5 = por %p2321_p9, %p2320_p7 }
  0x4f   : > { %p2316_p4 = pneg %p2315_p2 }
  0x51   : > { %p2323_p10 = pnand %p2322_p5, %p2316_p4 }
  0x53   : > { %2326 = shalt.err (!%p2323_p10)
}
  0x54   : > { %2160 = dma.hbm_to_vmem [thread:$0]  (!%p2795_p6), %s3306_s3, 256, %s2799_s21, [#allocation9], %s3286_s28, %s3286_s28, %s3288_s14  }
  0x55   : > { %s2327_s24 = scalar_lea.hbm %s3269_s5, 128 }
  0x56   : > { %p2328_p11 = scmp.ne.s32.totalorder %s3269_s5, %s2327_s24  ;;  %p2334_p0 = scmp.lt.u32.totalorder %s2327_s24, %s3269_s5 }
  0x58   : > { %p2330_p12 = pnand %p2328_p11, %p2811_p8 }
  0x5a   : > { %p2331_p13 = pneg %p2330_p12 }
  0x5c   : > { %p2336_p2 = pnand %p2334_p0, %p2331_p13 }
  0x5e   : > { %2339 = shalt.err (!%p2336_p2)
}
  0x5f   : > { %s2340_s18 = scalar_lea.vmem %s436_s23, 128  ;;  %p2348_p5 = scmp.lt.s32.totalorder %s436_s23, %s436_s23 }
  0x60   : > { %p2341_p4 = scmp.ne.s32.totalorder %s436_s23, %s2340_s18  ;;  %p2349_p10 = scmp.lt.s32.totalorder %s2340_s18, %s2340_s18 }
  0x62   : > { %p2343_p7 = pnand %p2341_p4, %p2811_p8  ;;  %p2350_p3 = por %p2349_p10, %p2348_p5 }
  0x64   : > { %p2344_p9 = pneg %p2343_p7 }
  0x66   : > { %p2351_p1 = pnand %p2350_p3, %p2344_p9 }
  0x68   : > { %2354 = shalt.err (!%p2351_p1)
}
  0x69   : > { %2166 = dma.hbm_to_vmem [thread:$0]  (!%p2795_p6), %s3269_s5, 128, %s436_s23, [#allocation12]  }
  0x6a   : > { %s2662_s10 = smov [#allocation14]   ;;  %s2663_s16 = smov [#allocation7]  }
  0x6b   : > { %s458_s11 = sshll.u32 %s2662_s10, 4  ;;  %s395_s24 = sshll.u32 %s2663_s16, 4  ;;  %s459_s11 = int_to_ptr.vmem [resolvable:$true] %s458_s11  ;;  %s396_s24 = int_to_ptr.vmem [resolvable:$true] %s395_s24 }
  0x6c   : > { %s2355_s22 = scalar_lea.hbm %s3271_s7, 256 }
  0x6d   : > { %p2356_p1 = scmp.ne.s32.totalorder %s3271_s7, %s2355_s22  ;;  %p2362_p12 = scmp.lt.u32.totalorder %s2355_s22, %s3271_s7 }
  0x6f   : > { %p2358_p3 = pnand %p2356_p1, %p2811_p8 }
  0x71   : > { %p2359_p11 = pneg %p2358_p3 }
  0x73   : > { %p2364_p13 = pnand %p2362_p12, %p2359_p11 }
  0x75   : > { %2367 = shalt.err (!%p2364_p13)
}
  0x76   : > { %s2368_s23 = scalar_lea.vmem %s459_s11, 256  ;;  %p2376_p7 = scmp.lt.s32.totalorder %s459_s11, %s459_s11 }
  0x77   : > { %p2369_p0 = scmp.ne.s32.totalorder %s459_s11, %s2368_s23  ;;  %p2377_p9 = scmp.lt.s32.totalorder %s2368_s23, %s2368_s23 }
  0x79   : > { %p2371_p2 = pnand %p2369_p0, %p2811_p8  ;;  %p2378_p5 = por %p2377_p9, %p2376_p7 }
  0x7b   : > { %p2372_p4 = pneg %p2371_p2 }
  0x7d   : > { %p2379_p10 = pnand %p2378_p5, %p2372_p4 }
  0x7f   : > { %2382 = shalt.err (!%p2379_p10)
}
  0x80   : > { %s3307_s0 = smov 128   ;;  %s3308_s2 = sld [smem:[#allocation31_spill]] }
  0x81   : > { %2172 = dma.hbm_to_vmem [thread:$0]  (!%p2795_p6), %s3271_s7, 256, %s459_s11, [#allocation15], %s3307_s0, %s3307_s0, %s3288_s14  }
  0x86   : > { %s2383_s20 = scalar_lea.hbm %s3308_s2, 256 }
  0x87   : > { %p2384_p1 = scmp.ne.s32.totalorder %s3308_s2, %s2383_s20  ;;  %p2390_p12 = scmp.lt.u32.totalorder %s2383_s20, %s3308_s2 }
  0x89   : > { %p2386_p3 = pnand %p2384_p1, %p2811_p8 }
  0x8b   : > { %p2387_p11 = pneg %p2386_p3 }
  0x8d   : > { %p2392_p13 = pnand %p2390_p12, %p2387_p11 }
  0x8f   : > { %2395 = shalt.err (!%p2392_p13)
}
  0x90   : > { %s2396_s23 = scalar_lea.vmem %s396_s24, 256  ;;  %p2404_p7 = scmp.lt.s32.totalorder %s396_s24, %s396_s24 }
  0x91   : > { %p2397_p0 = scmp.ne.s32.totalorder %s396_s24, %s2396_s23  ;;  %p2405_p9 = scmp.lt.s32.totalorder %s2396_s23, %s2396_s23 }
  0x93   : > { %p2399_p2 = pnand %p2397_p0, %p2811_p8  ;;  %p2406_p5 = por %p2405_p9, %p2404_p7 }
  0x95   : > { %p2400_p4 = pneg %p2399_p2 }
  0x97   : > { %p2407_p10 = pnand %p2406_p5, %p2400_p4 }
  0x99   : > { %2410 = shalt.err (!%p2407_p10)
}
  0x9a   : > { %2157 = dma.hbm_to_vmem [thread:$0]  (!%p2795_p6), %s3308_s2, 256, %s396_s24, [#allocation6], %s3307_s0, %s3307_s0, %s3288_s14  }
  0x9b   : > { %s2664_s10 = smov [#allocation10]   ;;  %s2665_s17 = smov [#allocation13]  }
  0x9c   : > { %s421_s16 = sshll.u32 %s2664_s10, 4  ;;  %s445_s20 = sshll.u32 %s2665_s17, 4  ;;  %s422_s16 = int_to_ptr.vmem [resolvable:$true] %s421_s16  ;;  %s446_s20 = int_to_ptr.vmem [resolvable:$true] %s445_s20 }
  0x9d   : > { %s3309_s4 = sld [smem:[#allocation33_spill]] }
  0xa3   : > { %s2411_s18 = scalar_lea.hbm %s3309_s4, 256 }
  0xa4   : > { %p2412_p1 = scmp.ne.s32.totalorder %s3309_s4, %s2411_s18  ;;  %p2418_p12 = scmp.lt.u32.totalorder %s2411_s18, %s3309_s4 }
  0xa6   : > { %p2414_p3 = pnand %p2412_p1, %p2811_p8 }
  0xa8   : > { %p2415_p11 = pneg %p2414_p3 }
  0xaa   : > { %p2420_p13 = pnand %p2418_p12, %p2415_p11 }
  0xac   : > { %2423 = shalt.err (!%p2420_p13)
}
  0xad   : > { %s2424_s24 = scalar_lea.vmem %s422_s16, 256  ;;  %p2432_p7 = scmp.lt.s32.totalorder %s422_s16, %s422_s16 }
  0xae   : > { %p2425_p0 = scmp.ne.s32.totalorder %s422_s16, %s2424_s24  ;;  %p2433_p9 = scmp.lt.s32.totalorder %s2424_s24, %s2424_s24 }
  0xb0   : > { %p2427_p2 = pnand %p2425_p0, %p2811_p8  ;;  %p2434_p5 = por %p2433_p9, %p2432_p7 }
  0xb2   : > { %p2428_p4 = pneg %p2427_p2 }
  0xb4   : > { %p2435_p10 = pnand %p2434_p5, %p2428_p4 }
  0xb6   : > { %2438 = shalt.err (!%p2435_p10)
}
  0xb7   : > { %2163 = dma.hbm_to_vmem [thread:$0]  (!%p2795_p6), %s3309_s4, 256, %s422_s16, [#allocation9], %s3307_s0, %s3307_s0, %s3288_s14  }
  0xb8   : > { %s2439_s22 = scalar_lea.hbm %s3270_s6, 256 }
  0xb9   : > { %p2440_p1 = scmp.ne.s32.totalorder %s3270_s6, %s2439_s22  ;;  %p2446_p12 = scmp.lt.u32.totalorder %s2439_s22, %s3270_s6 }
  0xbb   : > { %p2442_p3 = pnand %p2440_p1, %p2811_p8 }
  0xbd   : > { %p2443_p11 = pneg %p2442_p3 }
  0xbf   : > { %p2448_p13 = pnand %p2446_p12, %p2443_p11 }
  0xc1   : > { %2451 = shalt.err (!%p2448_p13)
}
  0xc2   : > { %s2452_s11 = scalar_lea.vmem %s446_s20, 256  ;;  %p2460_p7 = scmp.lt.s32.totalorder %s446_s20, %s446_s20 }
  0xc3   : > { %p2453_p0 = scmp.ne.s32.totalorder %s446_s20, %s2452_s11  ;;  %p2461_p9 = scmp.lt.s32.totalorder %s2452_s11, %s2452_s11 }
  0xc5   : > { %p2455_p2 = pnand %p2453_p0, %p2811_p8  ;;  %p2462_p5 = por %p2461_p9, %p2460_p7 }
  0xc7   : > { %p2456_p4 = pneg %p2455_p2 }
  0xc9   : > { %p2463_p10 = pnand %p2462_p5, %p2456_p4 }
  0xcb   : > { %2466 = shalt.err (!%p2463_p10)
}
  0xcc   : > { %2169 = dma.hbm_to_vmem [thread:$0]  (!%p2795_p6), %s3270_s6, 256, %s446_s20, [#allocation12], %s3307_s0, %s3307_s0, %s3288_s14  }
  0xcd   : > { %s2666_s1 = smov [#allocation16]   ;;  %s2667_s10 = smov [#allocation17]  }
  0xce   : > { %s472_s28 = sshll.u32 %s2666_s1, 4  ;;  %s482_s17 = sshll.u32 %s2667_s10, 4  ;;  %s473_s28 = int_to_ptr.vmem [resolvable:$true] %s472_s28  ;;  %s483_s17 = int_to_ptr.vmem [resolvable:$true] %s482_s17 }
  0xcf   : > { %s2467_s18 = scalar_lea.hbm %s3272_s8, 128 }
  0xd0   : > { %p2468_p1 = scmp.ne.s32.totalorder %s3272_s8, %s2467_s18  ;;  %p2474_p12 = scmp.lt.u32.totalorder %s2467_s18, %s3272_s8 }
  0xd2   : > { %p2470_p3 = pnand %p2468_p1, %p2811_p8 }
  0xd4   : > { %p2471_p11 = pneg %p2470_p3 }
  0xd6   : > { %p2476_p13 = pnand %p2474_p12, %p2471_p11 }
  0xd8   : > { %2479 = shalt.err (!%p2476_p13)
}
  0xd9   : > { %s2480_s20 = scalar_lea.vmem %s473_s28, 128  ;;  %p2488_p7 = scmp.lt.s32.totalorder %s473_s28, %s473_s28 }
  0xda   : > { %p2481_p0 = scmp.ne.s32.totalorder %s473_s28, %s2480_s20  ;;  %p2489_p9 = scmp.lt.s32.totalorder %s2480_s20, %s2480_s20 }
  0xdc   : > { %p2483_p2 = pnand %p2481_p0, %p2811_p8  ;;  %p2490_p5 = por %p2489_p9, %p2488_p7 }
  0xde   : > { %p2484_p4 = pneg %p2483_p2 }
  0xe0   : > { %p2491_p10 = pnand %p2490_p5, %p2484_p4 }
  0xe2   : > { %2494 = shalt.err (!%p2491_p10)
}
  0xe3   : > { %2175 = dma.hbm_to_vmem [thread:$0]  (!%p2795_p6), %s3272_s8, 128, %s473_s28, [#allocation15]  }
  0xe4   : > { %s2495_s13 = scalar_lea.hbm %s3273_s9, 256 }
  0xe5   : > { %p2496_p1 = scmp.ne.s32.totalorder %s3273_s9, %s2495_s13  ;;  %p2502_p12 = scmp.lt.u32.totalorder %s2495_s13, %s3273_s9 }
  0xe7   : > { %p2498_p3 = pnand %p2496_p1, %p2811_p8 }
  0xe9   : > { %p2499_p11 = pneg %p2498_p3 }
  0xeb   : > { %p2504_p13 = pnand %p2502_p12, %p2499_p11 }
  0xed   : > { %2507 = shalt.err (!%p2504_p13)
}
  0xee   : > { %s2508_s16 = scalar_lea.vmem %s483_s17, 256  ;;  %p2516_p7 = scmp.lt.s32.totalorder %s483_s17, %s483_s17 }
  0xef   : > { %p2509_p0 = scmp.ne.s32.totalorder %s483_s17, %s2508_s16  ;;  %p2517_p9 = scmp.lt.s32.totalorder %s2508_s16, %s2508_s16 }
  0xf1   : > { %p2511_p2 = pnand %p2509_p0, %p2811_p8  ;;  %p2518_p5 = por %p2517_p9, %p2516_p7 }
  0xf3   : > { %p2512_p4 = pneg %p2511_p2 }
  0xf5   : > { %p2519_p10 = pnand %p2518_p5, %p2512_p4 }
  0xf7   : > { %2522 = shalt.err (!%p2519_p10)
}
  0xf8   : > { %2178 = dma.hbm_to_vmem [thread:$0]  (!%p2795_p6), %s3273_s9, 256, %s483_s17, [#allocation18], %s3307_s0, %s3307_s0, %s3288_s14  }
  0xf9   : > { %s1895_s12 = sadd.s32 4294967294, %s2655_s30   ;;  %s53_s19 = sadd.s32 1, %s2651_s29 }
  0xfa   : > { %s64_s24 = sadd.s32 1, %s2643_s27  ;;  %p55_p8 = scmp.ge.s32.totalorder %s53_s19, 2 }
  0xfb   : > { %p71_p1 = scmp.ne.s32.totalorder %s2643_s27, %s2639_s26  ;;  %p72_p3 = scmp.eq.s32.totalorder %s2655_s30, 0 }
  0xfc   : > { %p77_p11 = scmp.ne.s32.totalorder %s2639_s26, %s2635_s25  ;;  %s3336_s19 = smov (%p55_p8, %s53_s19), 0 }
  0xfd   : > { %p3013_p12 = por %p72_p3, %p71_p1  ;;  %p3311_p13 = scmp.ne.s32.totalorder %s3300_s15, 0 }
  0xfe   : > { %s57_s10 = ssub.s32 %s2651_s29, %s3336_s19  ;;  %s3313_s22 = sadd.s32 4294967295, %s2655_s30  }
  0xff   : > { %p3019_p6 = por %p3311_p13, %p77_p11  ;;  %p357_p0 = scmp.eq.s32.totalorder %s3313_s22, 1 }
 0x100   : > { %p62_p2 = scmp.eq.s32.totalorder %s57_s10, 0  ;;  %p363_p4 = scmp.eq.s32.totalorder %s1895_s12, 1 }
 0x101   : > { %p3027_p7 = por %p357_p0, %p71_p1  ;;  %p2196_p9 = scmp.lt.s32.totalorder %s2655_s30, 2 }
 0x102   : > { %s3033_s18 = scalar_select %p62_p2, %s2643_s27, %s64_s24  }
 0x103   : > { %s3314_s13 = scalar_select %p3027_p7, 1, 0 }
 0x104   : > { %p3035_p5 = por %p363_p4, %p77_p11  ;;  %s505_s23 = sand.u32 1, %s2643_s27  }
 0x105   : > { %s2103_s11 = smul.u32 48, %s505_s23  ;;  %p3043_p10 = pnand %p2196_p9, %p3013_p12 }
 0x106   : > { %s3315_s21 = scalar_select %p3035_p5, 1, 0 }
 0x107   : > { %s2104_s16 = smul.u32 768, %s2651_s29  ;;  %s3317_s10 = sld [smem:[#allocation29_spill]] }
 0x108   : > { %s509_s24 = scalar_lea.vmem [#allocation2], %s2103_s11  ;;  %s3054_s1 = scalar_lea.sflag [#allocation3], %s505_s23 }
 0x109   : > { %s519_s14 = sshll.u32 %s509_s24, 4  ;;  %p2525_p1 = pneg %p3043_p10  ;;  %s3052_s14 = int_to_ptr.vmem [resolvable:$true] %s519_s14 }
 0x10d   : > { %s3050_s22 = scalar_lea.hbm %s3317_s10, %s2104_s16  ;;  %s2528_s12 = scalar_lea.hbm %s3317_s10, 1536 }
 0x10e   : > { %s2523_s2 = scalar_lea.hbm %s3050_s22, 768  ;;  %p2529_p12 = scmp.lt.u32.totalorder %s3050_s22, %s3317_s10 }
 0x10f   : > { %p2524_p8 = scmp.ne.s32.totalorder %s3050_s22, %s2523_s2  ;;  %p2530_p13 = scmp.lt.u32.totalorder %s2528_s12, %s2523_s2 }
 0x110   : > { %p2532_p2 = scmp.lt.u32.totalorder %s2523_s2, %s3050_s22 }
 0x111   : > { %p2526_p3 = pnand %p2525_p1, %p2524_p8  ;;  %p2531_p0 = por %p2530_p13, %p2529_p12 }
 0x113   : > { %p2527_p11 = pneg %p2526_p3  ;;  %p2533_p4 = por %p2532_p2, %p2531_p0 }
 0x115   : > { %p2534_p9 = pnand %p2533_p4, %p2527_p11 }
 0x117   : > { %2537 = shalt.err (!%p2534_p9)
}
 0x118   : > { %s2538_s23 = scalar_lea.vmem %s3052_s14, 768  ;;  %s2668_s11 = smov [#allocation2]  }
 0x119   : > { %p2539_p8 = scmp.ne.s32.totalorder %s3052_s14, %s2538_s23  ;;  %s2543_s24 = sshll.u32 %s2668_s11, 4  ;;  %s2544_s24 = int_to_ptr.vmem [resolvable:$false] %s2543_s24 }
 0x11a   : > { %s2545_s3 = scalar_lea.vmem %s2544_s24, 1536  ;;  %p2546_p7 = scmp.lt.s32.totalorder %s3052_s14, %s2544_s24 }
 0x11b   : > { %p2541_p3 = pnand %p2539_p8, %p2525_p1  ;;  %p2547_p12 = scmp.lt.s32.totalorder %s2545_s3, %s2538_s23 }
 0x11d   : > { %p2542_p5 = pneg %p2541_p3  ;;  %p2548_p13 = por %p2547_p12, %p2546_p7 }
 0x11f   : > { %p2549_p0 = pnand %p2548_p13, %p2542_p5 }
 0x121   : > { %2552 = shalt.err (!%p2549_p0)
}
 0x122   : > { %s3318_s2 = smov 8   ;;  %s3319_s4 = sld [smem:[#allocation28_spill]] }
 0x123   : > { %2182 = dma.hbm_to_vmem [thread:$0]  (!%p3043_p10), %s3050_s22, 768, %s3052_s14, %s3054_s1, %s3307_s0, %s3307_s0, %s3318_s2  }
 0x128   : > { %p3320_p1 = scmp.ne.s32.totalorder %s3319_s4, 0 }
 0x129   : > { %s3088_s16 = sand.u32 (!%p3320_p1), 1, %s2639_s26  }
 0x12a   : > { %531 = sbr.rel (%p3320_p1) target bundleno = 2130 (0x852), region = 72  ;;  %s534_s12 = scalar_lea.sflag (!%p3320_p1), [#allocation3], %s3088_s16 }
 0x12b   : > { %s2105_s20 = smul.u32 (!%p3320_p1), 48, %s3088_s16 }
 0x12d   : > { %s537_s28 = scalar_lea.vmem (!%p3320_p1), [#allocation2], %s2105_s20 }
 0x131   : > { %2606 = dma.done.wait (%p3019_p6), %s534_s12, 768  }
 0x132   : > { %2608 = vsyncadd (%p3019_p6), %s534_s12, 4294966528  ;;  %p3321_p7 = scmp.ne.s32.totalorder %s3300_s15, 0 }
 0x134   : > { %2610 = dma.done.wait (%p3321_p7), [#allocation6], 512  }
 0x135   : > { %2612 = vsyncadd (%p3321_p7), [#allocation6], 4294966784 }
 0x136   : > { %2614 = dma.done.wait (%p3321_p7), [#allocation9], 512  }
 0x137   : > { %2616 = vsyncadd (%p3321_p7), [#allocation9], 4294966784 }
 0x138   : > { %2618 = dma.done.wait (%p3321_p7), [#allocation12], 384  }
 0x139   : > { %2620 = vsyncadd (%p3321_p7), [#allocation12], 4294966912 }
 0x13a   : > { %2622 = dma.done.wait (%p3321_p7), [#allocation15], 384  }
 0x13b   : > { %2624 = vsyncadd (%p3321_p7), [#allocation15], 4294966912 }
 0x13c   : > { %2626 = dma.done.wait (%p3321_p7), [#allocation18], 256  }
 0x13d   : > { %2628 = vsyncadd (%p3321_p7), [#allocation18], 4294967040  ;;  %v618_v0 = vld [vmem:[%s537_s28] sm:$0xff]  ;;  %v619_v1 = vld [vmem:[%s537_s28 + $0x8] sm:$0xff]  ;;  %vm680_vm0 = vcmask 130048   ;;  %v2669_v36 = vmov 0.0|0.0  }
 0x13e   : > { %v1918_v2 = vld [vmem:[%s537_s28 + $0x10] sm:$0xff]  ;;  %v3118_v3 = vmul.f32 255.0, %v618_v0  ;;  %v3120_v4 = vmul.f32 255.0, %v619_v1  ;;  %v1919_v5 = vld [vmem:[%s537_s28 + $0x18] sm:$0xff]  ;;  %v1920_v7 = vld [vmem:[%s537_s28 + $0x20] sm:$0xff]  ;;  %s3322_s0 = sld [smem:[#allocation34_spill]] }
 0x13f   : > { %v3122_v6 = vmul.f32 255.0, %v1918_v2  ;;  %v1921_v8 = vld [vmem:[%s537_s28 + $0x28] sm:$0xff]  ;;  %v3124_v9 = vmul.f32 255.0, %v1919_v5  ;;  %v3126_v10 = vmul.f32 255.0, %v1920_v7  ;;  %v666_v12 = vld [vmem:[#allocation5] sm:$0xff]  ;;  %v668_v13 = vld [vmem:[#allocation7] sm:$0xff] }
 0x140   : > { %v3128_v11 = vmul.f32 255.0, %v1921_v8  ;;  %v632_v14 = vmul.f32 0.299, %v3118_v3  ;;  %v633_v15 = vmul.f32 0.299, %v3120_v4  ;;  %2003 = vmatprep.mubr.msk.f32.mxu0 %vm680_vm0, %v666_v12  ;;  %v669_v21 = vld [vmem:[#allocation7 + $0x8] sm:$0xff] }
 0x141   : > { %v634_v16 = vmul.f32 0.587, %v3122_v6  ;;  %v635_v17 = vmul.f32 0.587, %v3124_v9  ;;  %v638_v18 = vmul.f32 0.114, %v3126_v10  ;;  %v2079_v23 = vpack.c.bf16 %v669_v21, %v668_v13 }
 0x142   : > { %v639_v19 = vmul.f32 0.114, %v3128_v11  ;;  %v667_v29 = vld [vmem:[#allocation5 + $0x8] sm:$0xff]  ;;  %v670_v32 = vld [vmem:[#allocation8] sm:$0xff]  ;;  %v672_v33 = vld [vmem:[#allocation10] sm:$0xff]  ;;  %v648_v47 = vmul.f32 0.5, %v3126_v10 }
 0x143   : > { %v636_v20 = vadd.f32 %v634_v16, %v632_v14  ;;  %v637_v22 = vadd.f32 %v635_v17, %v633_v15  ;;  %2080 = vmatprep.subr.bf16.mxu1 %v2079_v23  ;;  %v673_v34 = vld [vmem:[#allocation10 + $0x8] sm:$0xff]  ;;  %v674_v38 = vld [vmem:[#allocation17] sm:$0xff]  ;;  %v642_v39 = vmul.f32 -0.168736, %v3118_v3  ;;  %v643_v40 = vmul.f32 -0.168736, %v3120_v4 }
 0x144   : > { %2082 = vmatpush3.bf16.msra.mxu1 %v2079_v23  ;;  %v2087_v35 = vpack.c.bf16 %v673_v34, %v672_v33  ;;  %v675_v37 = vld [vmem:[#allocation17 + $0x8] sm:$0xff]  ;;  %v644_v41 = vmul.f32 0.331264, %v3122_v6  ;;  %v645_v42 = vmul.f32 0.331264, %v3124_v9  ;;  %v649_v51 = vmul.f32 0.5, %v3128_v11 }
 0x145   : > { %v640_v24 = vadd.f32 %v638_v18, %v636_v20  ;;  %v641_v25 = vadd.f32 %v639_v19, %v637_v22  ;;  %v677_v61 = vld [vmem:[%s3322_s0 + $0x8] sm:$0xff]  ;;  %v676_v63 = vld [vmem:[%s3322_s0] sm:$0xff]  ;;  %vm2670_vm1 = vmmov 0   ;;  %v2671_v16 = vmov 0.0   ;;  %v1021_v19 = vld [vmem:[#allocation13 + $0x8] sm:$0xff]  ;;  %s3323_s11 = sld [smem:[#allocation35_spill]] }
 0x146   : > { %2088 = vmatprep.subr.bf16.mxu1 %v2087_v35  ;;  %v646_v49 = vsub.f32 %v642_v39, %v644_v41  ;;  %v647_v50 = vsub.f32 %v643_v40, %v645_v42  ;;  %v671_v14 = vld [vmem:[#allocation8 + $0x8] sm:$0xff]  ;;  %v1019_v17 = vld [vmem:[#allocation11] sm:$0xff]  ;;  %vm1182_vm2 = vcmask 64512   ;;  %s3324_s2 = sld [smem:[#allocation36_spill]]  ;;  %s3191_s4 = scalar_lea.vmem [#allocation19], %s2105_s20 }
 0x147   : > { %v1922_v26 = vadd.f32 -128.0, %v640_v24  ;;  %v1923_v27 = vadd.f32 -128.0, %v641_v25  ;;  %v1020_v18 = vld [vmem:[#allocation13] sm:$0xff]  ;;  %v1022_v25 = vld [vmem:[#allocation14] sm:$0xff]  ;;  %s3325_s20 = sld [smem:[#allocation27_spill]]  ;;  %s1716_s28 = sshll.u32 %s3191_s4, 4  ;;  %s3207_s28 = int_to_ptr.vmem [resolvable:$true] %s1716_s28 }
 0x148   : > { %v650_v56 = vadd.f32 %v648_v47, %v646_v49  ;;  %v651_v57 = vadd.f32 %v649_v51, %v647_v50  ;;  %v2095_v21 = vpack.c.bf16 %v1021_v19, %v1020_v18  ;;  %v1024_v50 = vld [vmem:[#allocation16] sm:$0xff]  ;;  %s3326_s17 = sld [smem:[#allocation37_spill]]  ;;  %s1700_s1 = scalar_lea.sflag [#allocation4], %s3088_s16 }
 0x149   : > { %v2075_v28 = vpack.c.bf16 %v1923_v27, %v1922_v26  ;;  %v654_v26 = vmul.f32 0.5, %v3118_v3  ;;  %v655_v27 = vmul.f32 0.5, %v3120_v4  ;;  %s2553_s23 = scalar_lea.vmem %s3207_s28, 768  ;;  %p3327_p5 = scmp.ne.s32.totalorder %s3314_s13, 0 }
 0x14a   : > { %v652_v0 = vadd.f32 128.0, %v650_v56  ;;  %v653_v1 = vadd.f32 128.0, %v651_v57  ;;  %p2554_p6 = scmp.ne.s32.totalorder %s3207_s28, %s2553_s23 }
 0x14b   : > { %2076 = vmatprep.subr.bf16.mxu0 %v2075_v28 }
 0x14c   : > { %2078 = vmatpush3.bf16.msra.mxu0 %v2075_v28  ;;  %v1932_v8 = vadd.f32 -128.0, %v652_v0  ;;  %v1933_v12 = vadd.f32 -128.0, %v653_v1  ;;  %v656_v28 = vmul.f32 0.418688, %v3122_v6  ;;  %p2555_p10 = pnand %p2554_p6, %p3327_p5 }
 0x14d   : > { %s2110_s12 = smul.u32 768, %s3325_s20 }
 0x14e   : > { %v2092_v15 = vpack.c.bf16 %v1933_v12, %v1932_v8  ;;  %v658_v33 = vsub.f32 %v654_v26, %v656_v28  ;;  %p2556_p11 = pneg %p2555_p10 }
 0x14f   : > { %2004 = vmatmul.mubr.msk.f32.vlgmr.msra.gmra.mrb[0].mxu0 %vm680_vm0, %v667_v29  ;;  %v657_v29 = vmul.f32 0.418688, %v3124_v9  ;;  %s3205_s22 = scalar_lea.hbm %s3326_s17, %s2110_s12 }
 0x150   : > { %2017 = vmatprep.mubr.msk.f32.mxu0 %vm680_vm0, %v670_v32  ;;  %v1025_v32 = vld [vmem:[%s3323_s11] sm:$0xff]  ;;  %s2672_s11 = smov [#allocation19]  }
 0x151   : > { %v659_v34 = vsub.f32 %v655_v27, %v657_v29  ;;  %s2557_s24 = sshll.u32 %s2672_s11, 4  ;;  %s2558_s24 = int_to_ptr.vmem [resolvable:$false] %s2557_s24 }
 0x152   : > { %s2559_s3 = scalar_lea.vmem %s2558_s24, 1536  ;;  %p2560_p2 = scmp.lt.s32.totalorder %s3207_s28, %s2558_s24 }
 0x153   : > { %p2561_p4 = scmp.lt.s32.totalorder %s2559_s3, %s2553_s23 }
 0x155   : > { %p2562_p9 = por %p2561_p4, %p2560_p2 }
 0x157   : > { %p2563_p8 = pnand %p2562_p9, %p2556_p11 }
 0x222   : > { %v2005_v30 = vpop.f32.mrb[0].mxu0 }
 0x223   : > { %v753_v31 = vpop.f32.mrb[1].mxu0 }
 0x224   : > { %2010 = vmatprep.mubr.msk.f32.mxu1 %vm680_vm0, %v753_v31 }
 0x225   : > { %2011 = vmatmul.mubr.msk.f32.vlgmr.msra.gmra.mrb[0].mxu1 %vm680_vm0, %v2005_v30 }
 0x226   : > { %2090 = vmatpush3.bf16.msra.mxu1 %v2087_v35  ;;  %v660_v35 = vmul.f32 0.081312, %v3126_v10 }
 0x227   : > { %2094 = vmatprep.subr.bf16.mxu1 %v2669_v36 }
 0x228   : > { %v662_v4 = vsub.f32 %v658_v33, %v660_v35 }
 0x22a   : > { %v664_v9 = vadd.f32 128.0, %v662_v4 }
 0x2f8   : > { %v2012_v43 = vpop.f32.mrb[0].mxu1 }
 0x2f9   : > { %v844_v44 = vmul.f32 %v2012_v43, %v675_v37  ;;  %v834_v45 = vpop.f32.mrb[1].mxu1  ;;  %v661_v37 = vmul.f32 0.081312, %v3128_v11  ;;  %v1023_v11 = vld [vmem:[#allocation14 + $0x8] sm:$0xff] }
 0x2fa   : > { %v843_v46 = vmul.f32 %v834_v45, %v674_v38  ;;  %v1026_v45 = vld [vmem:[%s3324_s2] sm:$0xff] }
 0x2fb   : > { %v2107_v48 = vround.rtne.f32 %v844_v44  ;;  %v663_v40 = vsub.f32 %v659_v34, %v661_v37 }
 0x2fc   : > { %v2106_v52 = vround.rtne.f32 %v843_v46 }
 0x2fd   : > { %v848_v53 = vsub.f32 %v844_v44, %v2107_v48  ;;  %v665_v42 = vadd.f32 128.0, %v663_v40 }
 0x2fe   : > { %v847_v54 = vsub.f32 %v843_v46, %v2106_v52  ;;  %v1940_v46 = vadd.f32 -128.0, %v664_v9 }
 0x2ff   : > { %v850_v55 = vmul.f32 %v848_v53, %v848_v53  ;;  %v1941_v47 = vadd.f32 -128.0, %v665_v42 }
 0x300   : > { %v849_v58 = vmul.f32 %v847_v54, %v847_v54 }
 0x301   : > { %v852_v59 = vmul.f32 %v850_v55, %v848_v53  ;;  %v2098_v49 = vpack.c.bf16 %v1941_v47, %v1940_v46 }
 0x302   : > { %v851_v60 = vmul.f32 %v849_v58, %v847_v54 }
 0x303   : > { %v854_v62 = vadd.f32 %v2107_v48, %v852_v59 }
 0x304   : > { %v853_v2 = vadd.f32 %v2106_v52, %v851_v60 }
 0x305   : > { %v856_v5 = vmul.f32 %v854_v62, %v677_v61 }
 0x306   : > { %v855_v7 = vmul.f32 %v853_v2, %v676_v63 }
 0x308   : > { %v2083_v13 = vpack.c.bf16 %v856_v5, %v855_v7 }
 0x30a   : > { %2084 = vmatprep.subr.bf16.mxu0 %v2083_v13 }
 0x30b   : > { %2086 = vmatpush3.bf16.msra.mxu0 %v2083_v13 }
 0x30c   : > { %2091 = vmatprep.subr.bf16.mxu0 %v2669_v36 }
 0x30e   : > { %2018 = vmatmul.mubr.msk.f32.vlgmr.msra.gmra.mrb[2].mxu0 %vm680_vm0, %v671_v14 }
 0x30f   : > { %2093 = vmatpush3.bf16.msra.mxu0 %v2092_v15  ;;  %2031 = vmatprep.mubr.msk.f32.mxu0 %vm2670_vm1, %v2671_v16 }
 0x312   : > { %2032 = vmatmul.mubr.msk.f32.vlgmr.msra.gmra.mrb[4].mxu0 %vm680_vm0, %v1019_v17 }
 0x313   : > { %2043 = vmatprep.mubr.msk.f32.mxu0 %vm1182_vm2, %v1022_v25 }
 0x3e1   : > { %v2019_v20 = vpop.f32.mrb[2].mxu0 }
 0x3e2   : > { %v929_v22 = vpop.f32.mrb[3].mxu0 }
 0x3e3   : > { %2024 = vmatprep.mubr.msk.f32.mxu1 %vm680_vm0, %v929_v22 }
 0x3e4   : > { %2025 = vmatmul.mubr.msk.f32.vlgmr.msra.gmra.mrb[2].mxu1 %vm680_vm0, %v2019_v20 }
 0x3e5   : > { %2096 = vmatpush3.bf16.msra.mxu1 %v2095_v21  ;;  %v1098_v23 = vpop.f32.mrb[4].mxu0  ;;  %2038 = vmatprep.mubr.msk.f32.mxu1 %vm2670_vm1, %v2671_v16 }
 0x3e6   : > { %v2033_v24 = vpop.f32.mrb[5].mxu0  ;;  %2046 = vmatprep.subr.mxu1 %v1024_v50 }
 0x3e8   : > { %2039 = vmatmul.mubr.msk.f32.vlgmr.msra.gmra.mrb[4].mxu1 %vm680_vm0, %v1098_v23 }
 0x3e9   : > { %2047 = vmatpush3.msra.mxu1 %v1024_v50 }
 0x3ea   : > { %2100 = vmatprep.subr.bf16.mxu1 %v2669_v36 }
 0x4b7   : > { %v2026_v30 = vpop.f32.mrb[2].mxu1 }
 0x4b8   : > { %v1010_v31 = vpop.f32.mrb[3].mxu1  ;;  %v1016_v61 = vadd.f32 128.0, %v2026_v30 }
 0x4b9   : > { %v1011_v1 = vadd.f32 128.0, %v1010_v31 }
 0x4bb   : > { %v1171_v38 = vpop.f32.mrb[4].mxu1 }
 0x4bc   : > { %v1175_v3 = vmul.f32 %v1171_v38, %v1025_v32  ;;  %v2040_v39 = vpop.f32.mrb[5].mxu1 }
 0x4be   : > { %v2108_v6 = vround.rtne.f32 %v1175_v3 }
 0x4c0   : > { %v1177_v41 = vsub.f32 %v1175_v3, %v2108_v6 }
 0x4c2   : > { %v1178_v43 = vmul.f32 %v1177_v41, %v1177_v41 }
 0x4c4   : > { %v1179_v44 = vmul.f32 %v1178_v43, %v1177_v41 }
 0x4c6   : > { %v1180_v10 = vadd.f32 %v2108_v6, %v1179_v44 }
 0x4c8   : > { %v1181_v48 = vmul.f32 %v1180_v10, %v1026_v45 }
 0x4ca   : > { %2041 = vmatprep.subr.mxu0 %v1181_v48 }
 0x4cb   : > { %2042 = vmatpush3.msra.mxu0 %v1181_v48 }
 0x4cc   : > { %2044 = vmatmul.mubr.msk.f32.vlgmr.msra.gmra.mrb[6].mxu0 %vm1182_vm2, %v1023_v11  ;;  %2097 = vmatprep.subr.bf16.mxu0 %v2669_v36 }
 0x4cd   : > { %2099 = vmatpush3.bf16.msra.mxu0 %v2098_v49  ;;  %2055 = vmatprep.mubr.msk.f32.mxu0 %vm2670_vm1, %v2671_v16 }
 0x4d0   : > { %2056 = vmatmul.mubr.msk.f32.vlgmr.msra.gmra.mrb[8].mxu0 %vm680_vm0, %v1019_v17 }
 0x4d1   : > { %2067 = vmatprep.mubr.msk.f32.mxu0 %vm1182_vm2, %v1022_v25 }
 0x59f   : > { %v2045_v51 = vpop.f32.mrb[6].mxu0 }
 0x5a0   : > { %v1255_v52 = vpop.f32.mrb[7].mxu0 }
 0x5a1   : > { %2048 = vmatprep.mubr.msk.f32.mxu1 %vm1182_vm2, %v1255_v52 }
 0x5a2   : > { %2049 = vmatmul.mubr.msk.f32.vlgmr.msra.gmra.mrb[6].mxu1 %vm1182_vm2, %v2045_v51 }
 0x5a3   : > { %2102 = vmatpush3.bf16.msra.mxu1 %v2095_v21  ;;  %v1413_v53 = vpop.f32.mrb[8].mxu0  ;;  %2062 = vmatprep.mubr.msk.f32.mxu1 %vm2670_vm1, %v2671_v16 }
 0x5a4   : > { %v2057_v54 = vpop.f32.mrb[9].mxu0  ;;  %2070 = vmatprep.subr.mxu1 %v1024_v50 }
 0x5a6   : > { %2063 = vmatmul.mubr.msk.f32.vlgmr.msra.gmra.mrb[8].mxu1 %vm680_vm0, %v1413_v53 }
 0x5a7   : > { %2071 = vmatpush3.msra.mxu1 %v1024_v50 }
 0x675   : > { %v2050_v55 = vpop.f32.mrb[6].mxu1 }
 0x676   : > { %v1342_v56 = vadd.f32 128.0, %v2050_v55  ;;  %v1336_v57 = vpop.f32.mrb[7].mxu1 }
 0x677   : > { %v1337_v36 = vadd.f32 128.0, %v1336_v57 }
 0x678   : > { %v1949_v58 = vadd.f32 -128.0, %v1342_v56 }
 0x679   : > { %v1948_v59 = vadd.f32 -128.0, %v1337_v36  ;;  %v1486_v60 = vpop.f32.mrb[8].mxu1 }
 0x67a   : > { %v1687_v62 = vmul.f32 1.772, %v1949_v58  ;;  %v1490_v63 = vmul.f32 %v1486_v60, %v1025_v32  ;;  %v2064_v0 = vpop.f32.mrb[9].mxu1  ;;  %v1670_v26 = vmul.f32 0.344136, %v1949_v58 }
 0x67b   : > { %v1686_v2 = vmul.f32 1.772, %v1948_v59  ;;  %v1669_v29 = vmul.f32 0.344136, %v1948_v59 }
 0x67c   : > { %v1689_v5 = vadd.f32 %v1687_v62, %v1016_v61  ;;  %v2109_v7 = vround.rtne.f32 %v1490_v63  ;;  %v1672_v33 = vsub.f32 %v1016_v61, %v1670_v26 }
 0x67d   : > { %v1688_v8 = vadd.f32 %v1686_v2, %v1011_v1  ;;  %v1671_v37 = vsub.f32 %v1011_v1, %v1669_v29 }
 0x67e   : > { %v1691_v12 = vmax.f32 %v1689_v5, 0.0  ;;  %v1492_v13 = vsub.f32 %v1490_v63, %v2109_v7 }
 0x67f   : > { %v1690_v14 = vmax.f32 %v1688_v8, 0.0 }
 0x680   : > { %v1693_v15 = vmin.f32 %v1691_v12, 255.0  ;;  %v1493_v16 = vmul.f32 %v1492_v13, %v1492_v13 }
 0x681   : > { %v1692_v17 = vmin.f32 %v1690_v14, 255.0 }
 0x682   : > { %v1695_v18 = vmul.f32 0.003921569, %v1693_v15  ;;  %v1494_v19 = vmul.f32 %v1493_v16, %v1492_v13 }
 0x683   : > { %v1694_v20 = vmul.f32 0.003921569, %v1692_v17 }
 0x684   : > { %1955 = vst.msk [vmem:[%s3191_s4 + $0x28] sm:$0xff] %vm680_vm0, %v1695_v18  ;;  %v1495_v21 = vadd.f32 %v2109_v7, %v1494_v19 }
 0x685   : > { %1954 = vst.msk [vmem:[%s3191_s4 + $0x20] sm:$0xff] %vm680_vm0, %v1694_v20 }
 0x686   : > { %v1496_v22 = vmul.f32 %v1495_v21, %v1026_v45 }
 0x688   : > { %2065 = vmatprep.subr.mxu0 %v1496_v22 }
 0x689   : > { %2066 = vmatpush3.msra.mxu0 %v1496_v22 }
 0x68a   : > { %2068 = vmatmul.mubr.msk.f32.vlgmr.msra.gmra.mrb[10].mxu0 %vm1182_vm2, %v1023_v11 }
 0x75d   : > { %v2069_v23 = vpop.f32.mrb[10].mxu0 }
 0x75e   : > { %v1563_v24 = vpop.f32.mrb[11].mxu0 }
 0x75f   : > { %2072 = vmatprep.mubr.msk.f32.mxu1 %vm1182_vm2, %v1563_v24 }
 0x760   : > { %2073 = vmatmul.mubr.msk.f32.vlgmr.msra.gmra.mrb[10].mxu1 %vm1182_vm2, %v2069_v23 }
 0x833   : > { %v2074_v25 = vpop.f32.mrb[10].mxu1 }
 0x834   : > { %v1650_v27 = vadd.f32 128.0, %v2074_v25  ;;  %v1644_v28 = vpop.f32.mrb[11].mxu1 }
 0x835   : > { %v1645_v30 = vadd.f32 128.0, %v1644_v28 }
 0x836   : > { %v1951_v31 = vadd.f32 -128.0, %v1650_v27 }
 0x837   : > { %v1950_v32 = vadd.f32 -128.0, %v1645_v30 }
 0x838   : > { %v1658_v34 = vmul.f32 1.402, %v1951_v31  ;;  %v1674_v35 = vmul.f32 0.714136, %v1951_v31 }
 0x839   : > { %v1657_v38 = vmul.f32 1.402, %v1950_v32  ;;  %v1673_v3 = vmul.f32 0.714136, %v1950_v32 }
 0x83a   : > { %v1660_v39 = vadd.f32 %v1658_v34, %v1016_v61  ;;  %v1676_v4 = vsub.f32 %v1672_v33, %v1674_v35 }
 0x83b   : > { %v1659_v40 = vadd.f32 %v1657_v38, %v1011_v1  ;;  %v1675_v6 = vsub.f32 %v1671_v37, %v1673_v3 }
 0x83c   : > { %v1662_v41 = vmax.f32 %v1660_v39, 0.0  ;;  %v1678_v9 = vmax.f32 %v1676_v4, 0.0 }
 0x83d   : > { %v1661_v42 = vmax.f32 %v1659_v40, 0.0  ;;  %v1677_v43 = vmax.f32 %v1675_v6, 0.0 }
 0x83e   : > { %v1664_v44 = vmin.f32 %v1662_v41, 255.0  ;;  %v1680_v45 = vmin.f32 %v1678_v9, 255.0 }
 0x83f   : > { %v1663_v46 = vmin.f32 %v1661_v42, 255.0  ;;  %v1679_v47 = vmin.f32 %v1677_v43, 255.0 }
 0x840   : > { %v1666_v10 = vmul.f32 0.003921569, %v1664_v44  ;;  %v1682_v48 = vmul.f32 0.003921569, %v1680_v45 }
 0x841   : > { %v1665_v11 = vmul.f32 0.003921569, %v1663_v46  ;;  %v1681_v49 = vmul.f32 0.003921569, %v1679_v47 }
 0x842   : > { %1668 = vst.msk [vmem:[%s3191_s4 + $0x8] sm:$0xff] %vm680_vm0, %v1666_v10  ;;  %1953 = vst.msk [vmem:[%s3191_s4 + $0x18] sm:$0xff] %vm680_vm0, %v1682_v48 }
 0x843   : > { %1667 = vst.msk [vmem:[%s3191_s4] sm:$0xff] %vm680_vm0, %v1665_v11  ;;  %1952 = vst.msk [vmem:[%s3191_s4 + $0x10] sm:$0xff] %vm680_vm0, %v1681_v49 }
 0x844   : > { %2566 = shalt.err (!%p2563_p8)
}
 0x845   : > { %s2567_s2 = scalar_lea.hbm %s3205_s22, 768  ;;  %s2571_s12 = scalar_lea.hbm %s3326_s17, 1536 }
 0x846   : > { %p2568_p3 = scmp.ne.s32.totalorder %s3205_s22, %s2567_s2  ;;  %p2572_p0 = scmp.lt.u32.totalorder %s3205_s22, %s3326_s17 }
 0x847   : > { %p2573_p1 = scmp.lt.u32.totalorder %s2571_s12, %s2567_s2  ;;  %p2575_p6 = scmp.lt.u32.totalorder %s2567_s2, %s3205_s22 }
 0x848   : > { %p2569_p12 = pnand %p2568_p3, %p3327_p5 }
 0x849   : > { %p2574_p7 = por %p2573_p1, %p2572_p0 }
 0x84a   : > { %p2570_p13 = pneg %p2569_p12 }
 0x84b   : > { %p2576_p10 = por %p2575_p6, %p2574_p7 }
 0x84d   : > { %p2577_p11 = pnand %p2576_p10, %p2570_p13 }
 0x84f   : > { %2580 = shalt.err (!%p2577_p11)
}
 0x850   : > { %s2673_s23 = smov 128   ;;  %s2674_s11 = smov 8  }
 0x851   : > { %2149 = dma.vmem_to_hbm [thread:$0]  (%p3327_p5), %s3207_s28, 768, %s3205_s22, %s1700_s1, %s2673_s23, %s2673_s23, %s2674_s11  }
 0x852 PF: > { %s1731_s24 = sand.u32 1, %s2635_s25   ;;  %p3328_p2 = scmp.ne.s32.totalorder %s3315_s21, 0 }
 0x853   : > { %p3329_p4 = scmp.ge.s32.totalorder %s2655_s30, 2  ;;  %s1732_s3 = scalar_lea.sflag [#allocation4], %s1731_s24 }
 0x855   : > { %p2184_p9 = pnand %p3329_p4, %p3328_p2 }
 0x857   : > { %2630 = dma.done.wait (!%p2184_p9), %s1732_s3, 768  }
 0x858   : > { %2632 = vsyncadd (!%p2184_p9), %s1732_s3, 4294966528  ;;  %s34_s30 = sadd.s32 1, %s2655_s30   ;;  %s3330_s25 = smov %s2639_s26 }
 0x859   : > { %p31_p8 = scmp.ge.s32.totalorder %s34_s30, 4   ;;  %s3331_s26 = smov %s2643_s27 }
 0x85a   : > { %s3332_s27 = smov %s3033_s18  ;;  %s3333_s28 = smov %s2651_s29 }
 0x85b   : > { %s3334_s29 = smov %s3336_s19  ;;  %33 = sbr.rel (!%p31_p8) target bundleno = 21 (0x15), region = 157 }
 0x862   :  { %1737 = vsyncpa [#allocation3], 1 }
 0x863   :  { %1739 = vsyncpa [#allocation3 + $0x1], 1 }
 0x864   :  { %1740 = vsyncpa [#allocation6], 1 }
 0x865   :  { %1741 = vsyncpa [#allocation9], 1 }
 0x866   :  { %1742 = vsyncpa [#allocation12], 1 }
 0x867   :  { %1743 = vsyncpa [#allocation15], 1 }
 0x868   :  { %1744 = vsyncpa [#allocation18], 1 }
 0x869   :  { %1745 = vsyncpa [#allocation4], 1 }
 0x86a   :  { %1747 = vsyncpa [#allocation4 + $0x1], 1 }

</bundles_post_ra>
